<compile_context>
chip_gen: v5e
topology: v5e:2x2
jax: 0.10.0
libtpu: 0.0.40
codegen_flags: <defaults>
</compile_context>

<pallas_src>
import jax
import jax.numpy as jnp
from jax.experimental import pallas as pl
from jax.experimental.pallas import tpu as pltpu


_COMPUTE_DTYPE = jnp.bfloat16   # MXU-native operand dtype on v5e/v6e/v7x
_TM_MAX = 512                   # max rows per output tile
_TN_MAX = 1024                  # max output-feature columns per tile
_TK_MAX = 1024                  # max contraction depth per k step


def _round_up(x: int, m: int) -> int:
    return ((x + m - 1) // m) * m


def _cdiv(a: int, b: int) -> int:
    return (a + b - 1) // b


def _fit_tile(dim: int, max_tile: int, align: int) -> int:
    """Largest tile <= max_tile, multiple of `align`, with minimal padding of `dim`."""
    dim_a = _round_up(max(dim, 1), align)
    if dim_a <= max_tile:
        return dim_a
    nblocks = _cdiv(dim_a, max_tile)
    return _round_up(_cdiv(dim_a, nblocks), align)


def _lane_align(f: int) -> int:
    # v6e/v7x MXU is 2x256^2: prefer 256-aligned feature tiles when the problem is
    # big enough; 128 avoids over-padding tiny feature dims (v5e MXU is 4x128^2).
    return 256 if _round_up(f, 128) >= 256 else 128


def _feature_tiles(features: int):
    align = _lane_align(features)
    tn = _fit_tile(features, _TN_MAX, align)
    tk = _fit_tile(features, _TK_MAX, align)
    return tn, tk


def _decor_linear_kernel(x_ref, wt_ref, b_ref, o_ref):
    k = pl.program_id(2)

    @pl.when(k == 0)
    def _init():
        o_ref[...] = jnp.zeros_like(o_ref)

    # x_ref: (tm, tk) bf16, wt_ref: (tk, tn) bf16 (weight stored pre-transposed).
    # Canonical contraction -> no per-step XLU transpose; f32 MXU accumulation
    # directly into the resident f32 output block (its (i, j) block index is
    # constant across k, so no VMEM scratch / finalize copy is needed).
    o_ref[...] += jnp.dot(x_ref[...], wt_ref[...],
                          preferred_element_type=jnp.float32)

    @pl.when(k == pl.num_programs(2) - 1)
    def _finalize():
        o_ref[...] += b_ref[...]   # bias added exactly once


def prepare_decor_params(weight: jax.Array, bias):
    """One-time weight/bias prep: transpose to (in, out), bf16 cast, tile-pad."""
    F = weight.shape[0]
    assert weight.shape == (F, F), "DecorLinear only supports square matrices"
    tn, tk = _feature_tiles(F)
    Np, Kp = _round_up(F, tn), _round_up(F, tk)

    w_t = jnp.asarray(weight).T.astype(_COMPUTE_DTYPE)          # (K=in, N=out)
    if (Kp, Np) != (F, F):
        w_t = jnp.zeros((Kp, Np), _COMPUTE_DTYPE).at[:F, :F].set(w_t)

    if bias is None:
        bias = jnp.zeros((F,), jnp.float32)
    b_p = jnp.asarray(bias, jnp.float32).reshape(1, F)
    if Np != F:
        b_p = jnp.zeros((1, Np), jnp.float32).at[:, :F].set(b_p)
    return w_t, b_p


def _decor_linear_2d(x2d: jax.Array, w_t: jax.Array, b_p: jax.Array,
                     in_features: int, out_features: int) -> jax.Array:
    B = x2d.shape[0]
    Kp, Np = w_t.shape
    tn, tk = _feature_tiles(out_features)
    tm = _fit_tile(B, _TM_MAX, 8)
    Bp = _round_up(B, tm)

    # Only x is padded/cast per call (zero K-padding contributes nothing).
    x_c = x2d.astype(_COMPUTE_DTYPE)
    if (Bp, Kp) != x_c.shape:
        x_c = jnp.zeros((Bp, Kp), _COMPUTE_DTYPE).at[:B, :in_features].set(x_c)

    grid = (Bp // tm, Np // tn, Kp // tk)

    cost = pl.CostEstimate(
        flops=2 * Bp * Np * Kp,
        transcendentals=0,
        bytes_accessed=(
            Bp * Kp * 2 * grid[1]      # bf16 x, re-read once per N block
            + Kp * Np * 2 * grid[0]    # bf16 W, re-read once per M block
            + Np * 4 * grid[0]         # f32 bias
            + Bp * Np * 4              # f32 output write
        ),
    )

    out_p = pl.pallas_call(
        _decor_linear_kernel,
        out_shape=jax.ShapeDtypeStruct((Bp, Np), jnp.float32),
        grid_spec=pltpu.PrefetchScalarGridSpec(
            num_scalar_prefetch=0,
            grid=grid,
            in_specs=[
                pl.BlockSpec((tm, tk), lambda i, j, k: (i, k)),   # x tile
                pl.BlockSpec((tk, tn), lambda i, j, k: (k, j)),   # W^T tile
                pl.BlockSpec((1, tn), lambda i, j, k: (0, j)),    # bias tile
            ],
            out_specs=pl.BlockSpec((tm, tn), lambda i, j, k: (i, j)),
        ),
        compiler_params=pltpu.CompilerParams(
            dimension_semantics=("parallel", "parallel", "arbitrary"),
        ),
        cost_estimate=cost,
    )(x_c, w_t, b_p)

    if (Bp, Np) != (B, out_features):
        out_p = out_p[:B, :out_features]
    return out_p


def decor_linear_forward(x: jax.Array, weight: jax.Array, bias=None) -> jax.Array:
    """y = x @ weight.T + bias (F.linear semantics) via the Pallas kernel.

    Convenience entry point that preps weight/bias on the fly; the module below
    caches the prepped params so the F^2 transpose/pad happens once.
    """
    F = weight.shape[0]
    w_t, b_p = prepare_decor_params(weight, bias)
    lead = x.shape[:-1]
    x2d = x.reshape(-1, x.shape[-1])
    y = _decor_linear_2d(x2d, w_t, b_p, F, F)
    return y.reshape(*lead, F)


class DecorLinearPallas:
    """JAX/Pallas equivalent of the PyTorch DecorLinear module (forward only)."""

    def __init__(self, in_features: int, out_features: int, bias: bool = False,
                 decorrelation_method: str = "copi", dtype=jnp.float32):
        assert in_features == out_features, "DecorLinear only supports square matrices"
        assert decorrelation_method in ["copi"], "DecorLinear only supports 'copi'"
        self.in_features = in_features
        self.out_features = out_features
        # reset_decor_parameters(): weight <- eye, bias <- zeros.
        # NOTE: in the PyTorch module the bias Parameter is created whenever
        # `bias is not None` (i.e. even for bias=False), and zero-initialized.
        self.weight = jnp.eye(in_features, dtype=dtype)
        self.bias = jnp.zeros((in_features,), dtype=dtype)
        self.eye = jnp.eye(in_features, dtype=dtype)
        # One-time kernel-ready params: pre-transposed, bf16-cast, tile-padded.
        # Re-padding W in HBM on every forward would dominate small-batch calls.
        self._w_prepped, self._b_prepped = prepare_decor_params(self.weight, self.bias)
        self.decorrelated_state = None
        # TODO(synk): update_grads() (COPI decorrelation update) is training-time
        # logic outside the forward pass; not implemented as a Pallas kernel here.

    def __call__(self, x: jax.Array) -> jax.Array:
        lead = x.shape[:-1]
        x2d = x.reshape(-1, x.shape[-1])
        y = _decor_linear_2d(x2d, self._w_prepped, self._b_prepped,
                             self.in_features, self.out_features)
        # Stateful caching mirrors the PyTorch module (not jit/functional-safe).
        self.decorrelated_state = y.reshape(*lead, self.out_features)
        return self.decorrelated_state


if __name__ == "__main__":
    key = jax.random.PRNGKey(0)
    batch, features = 8, 32

    x = jax.random.normal(key, (batch, features), dtype=jnp.float32)

    module = DecorLinearPallas(in_features=features, out_features=features, bias=False)
    y = jax.block_until_ready(module(x))

    # Reference with bf16-cast operands (kernel uses bf16 operands, f32 accumulation).
    xb = x.astype(jnp.bfloat16).astype(jnp.float32)
    wb = module.weight.astype(jnp.bfloat16).astype(jnp.float32)
    y_ref = xb @ wb.T + module.bias[None, :]
    assert y.shape == (batch, features)
    assert y.dtype == jnp.float32
    assert jnp.allclose(y, y_ref, atol=1e-5, rtol=1e-5), "mismatch vs reference"

    # Non-identity weight/bias with ragged shapes (exercises padding paths).
    k1, k2, k3 = jax.random.split(key, 3)
    B2, F2 = 13, 200
    x2 = jax.random.normal(k1, (B2, F2), dtype=jnp.float32)
    w2 = jax.random.normal(k2, (F2, F2), dtype=jnp.float32) * 0.1
    b2 = jax.random.normal(k3, (F2,), dtype=jnp.float32)
    y2 = jax.block_until_ready(decor_linear_forward(x2, w2, b2))
    x2b = x2.astype(jnp.bfloat16).astype(jnp.float32)
    w2b = w2.astype(jnp.bfloat16).astype(jnp.float32)
    y2_ref = jnp.dot(x2b, w2b.T, preferred_element_type=jnp.float32) + b2[None, :]
    assert y2.shape == (B2, F2)
    assert jnp.allclose(y2, y2_ref, atol=2e-2, rtol=2e-2), "mismatch vs reference (ragged)"

    print("KERNEL_OK")
</pallas_src>

<mosaic_0001>
module attributes {stable_mosaic.version = 11 : i64} {
  func.func @_decor_linear_kernel(%arg0: i32, %arg1: i32, %arg2: i32, %arg3: memref<8x128xbf16, #tpu.memory_space<vmem>>, %arg4: memref<128x128xbf16, #tpu.memory_space<vmem>>, %arg5: memref<1x128xf32, #tpu.memory_space<vmem>>, %arg6: memref<8x128xf32, #tpu.memory_space<vmem>>) attributes {dimension_semantics = [#tpu.dimension_semantics<parallel>, #tpu.dimension_semantics<parallel>, #tpu.dimension_semantics<arbitrary>], iteration_bounds = array<i64: 1, 1, 1>, scalar_prefetch = 0 : i64, scratch_operands = 0 : i64, tpu.core_type = #tpu.core_type<tc>, window_params = [{transform_indices = @transform_0, window_bounds = array<i64: 8, 128>}, {transform_indices = @transform_1, window_bounds = array<i64: 128, 128>}, {transform_indices = @transform_2, window_bounds = array<i64: 1, 128>}, {transform_indices = @transform_3, window_bounds = array<i64: 8, 128>}]} {
    %c0_i32 = arith.constant 0 : i32
    %0 = arith.cmpi eq, %arg2, %c0_i32 : i32
    %1 = arith.extui %0 : i1 to i32
    %c0_i32_0 = arith.constant 0 : i32
    %2 = arith.cmpi ne, %1, %c0_i32_0 : i32
    scf.if %2 {
      %cst_10 = arith.constant 0.000000e+00 : f32
      %12 = vector.broadcast %cst_10 : f32 to vector<8x128xf32>
      %c0_11 = arith.constant 0 : index
      %c0_12 = arith.constant 0 : index
      %13 = vector.load %arg6[%c0_11, %c0_12] : memref<8x128xf32, #tpu.memory_space<vmem>>, vector<8x128xf32>
      tpu.vector_store %arg6[%c0_11, %c0_12], %12 {strides = array<i32>} : memref<8x128xf32, #tpu.memory_space<vmem>>, vector<8x128xf32>,
    } else {
    }
    %c0 = arith.constant 0 : index
    %c0_1 = arith.constant 0 : index
    %3 = vector.load %arg6[%c0, %c0_1] : memref<8x128xf32, #tpu.memory_space<vmem>>, vector<8x128xf32>
    %c0_2 = arith.constant 0 : index
    %c0_3 = arith.constant 0 : index
    %4 = vector.load %arg3[%c0_2, %c0_3] : memref<8x128xbf16, #tpu.memory_space<vmem>>, vector<8x128xbf16>
    %c0_4 = arith.constant 0 : index
    %c0_5 = arith.constant 0 : index
    %5 = vector.load %arg4[%c0_4, %c0_5] : memref<128x128xbf16, #tpu.memory_space<vmem>>, vector<128x128xbf16>
    %cst = arith.constant dense<0.000000e+00> : vector<8x128xf32>
    %6 = tpu.matmul %4, %5, %cst {dimension_numbers = #tpu.dot_dimension_numbers<[1], [0], [0], [1], [0, 0, 1, 1], [], []>} : vector<8x128xbf16>, vector<128x128xbf16>, vector<8x128xf32> -> vector<8x128xf32>
    %7 = arith.addf %3, %6 : vector<8x128xf32>
    %c0_6 = arith.constant 0 : index
    %c0_7 = arith.constant 0 : index
    %8 = vector.load %arg6[%c0_6, %c0_7] : memref<8x128xf32, #tpu.memory_space<vmem>>, vector<8x128xf32>
    tpu.vector_store %arg6[%c0_6, %c0_7], %7 {strides = array<i32>} : memref<8x128xf32, #tpu.memory_space<vmem>>, vector<8x128xf32>,
    %c0_i32_8 = arith.constant 0 : i32
    %9 = arith.cmpi eq, %arg2, %c0_i32_8 : i32
    %10 = arith.extui %9 : i1 to i32
    %c0_i32_9 = arith.constant 0 : i32
    %11 = arith.cmpi ne, %10, %c0_i32_9 : i32
    scf.if %11 {
      %c0_10 = arith.constant 0 : index
      %c0_11 = arith.constant 0 : index
      %12 = vector.load %arg6[%c0_10, %c0_11] : memref<8x128xf32, #tpu.memory_space<vmem>>, vector<8x128xf32>
      %c0_12 = arith.constant 0 : index
      %c0_13 = arith.constant 0 : index
      %13 = vector.load %arg5[%c0_12, %c0_13] : memref<1x128xf32, #tpu.memory_space<vmem>>, vector<1x128xf32>
      %14 = vector.broadcast %13 : vector<1x128xf32> to vector<8x128xf32>
      %15 = arith.addf %12, %14 : vector<8x128xf32>
      %c0_14 = arith.constant 0 : index
      %c0_15 = arith.constant 0 : index
      %16 = vector.load %arg6[%c0_14, %c0_15] : memref<8x128xf32, #tpu.memory_space<vmem>>, vector<8x128xf32>
      tpu.vector_store %arg6[%c0_14, %c0_15], %15 {strides = array<i32>} : memref<8x128xf32, #tpu.memory_space<vmem>>, vector<8x128xf32>,
    } else {
    }
    return
  }
  func.func @transform_0(%arg0: i32, %arg1: i32, %arg2: i32) -> (i32, i32) {
    %c0_i32 = arith.constant 0 : i32
    return %arg0, %arg2 : i32, i32
  }
  func.func @transform_1(%arg0: i32, %arg1: i32, %arg2: i32) -> (i32, i32) {
    %c0_i32 = arith.constant 0 : i32
    return %arg2, %arg1 : i32, i32
  }
  func.func @transform_2(%arg0: i32, %arg1: i32, %arg2: i32) -> (i32, i32) {
    %c0_i32 = arith.constant 0 : i32
    %c0_i32_0 = arith.constant 0 : i32
    return %c0_i32, %arg1 : i32, i32
  }
  func.func @transform_3(%arg0: i32, %arg1: i32, %arg2: i32) -> (i32, i32) {
    %c0_i32 = arith.constant 0 : i32
    return %arg0, %arg1 : i32, i32
  }
}

</mosaic_0001>

<bundles_post_ra>
// kernel: tpu_custom_call.1
= control target key start
LH: loop header
LB: loop body
LE: loop exit
PB: predicated region body
PF: predicated region fallthrough
CT: control target
= control target key end

     0   :  { %8 = vsyncpa [#allocation3], 0  ;;  %s321_s0 = inlined_call_operand.hbm [shape: bf16[8,128], index: 0, kind: input, shape index: {}]   ;;  %s322_s1 = inlined_call_operand.hbm [shape: bf16[128,128], index: 1, kind: input, shape index: {}]   ;;  %s323_s2 = inlined_call_operand.vmem [shape: f32[1,128], index: 2, kind: input, shape index: {}]   ;;  %s324_s3 = inlined_call_operand.hbm [shape: f32[8,128], index: 3, kind: output, shape index: {}]  }
   0x1   :  { %9 = vsyncpa [#allocation6], 0 }
   0x2   :  { %10 = vsyncpa [#allocation4], 0  ;;  %s16_s14 = sshll.u32 %s321_s0, 4  ;;  %s284_s15 = smov [#allocation2]   ;;  %s17_s14 = int_to_ptr.hbm [resolvable:$true] %s16_s14 }
   0x3   :  { %s18_s16 = sshll.u32 %s284_s15, 4  ;;  %s26_s19 = sshll.u32 %s322_s1, 4  ;;  %s19_s16 = int_to_ptr.vmem [resolvable:$true] %s18_s16  ;;  %s27_s19 = int_to_ptr.hbm [resolvable:$true] %s26_s19 }
   0x4   :  { %21 = dma.hbm_to_vmem [thread:$0]  %s17_s14, 64, %s19_s16, [#allocation3]  }
   0x5   :  { %s285_s20 = smov [#allocation5]   ;;  %s286_s22 = smov 64  }
   0x6   :  { %s28_s21 = sshll.u32 %s285_s20, 4  ;;  %s287_s23 = smov 4   ;;  %s29_s21 = int_to_ptr.vmem [resolvable:$true] %s28_s21 }
   0x7   :  { %34 = dma.hbm_to_vmem [thread:$0]  %s27_s19, 1024, %s29_s21, [#allocation6], %s286_s22, %s286_s22, %s287_s23  }
   0x8   :  { %278 = dma.done.wait [#allocation3], 64  }
   0x9   :  { %279 = vsyncadd [#allocation3], 4294967232 }
   0xa   :  { %280 = dma.done.wait [#allocation6], 1024  }
   0xb   :  { %281 = vsyncadd [#allocation6], 4294966272  ;;  %v198_v0 = vld [vmem:[#allocation5 + $0x38] sm:$0xff]  ;;  %v197_v1 = vld [vmem:[#allocation5 + $0x30] sm:$0xff]  ;;  %s288_s24 = smov [#allocation7]   ;;  %s148_s28 = sshll.u32 %s324_s3, 4  ;;  %s149_s28 = int_to_ptr.hbm [resolvable:$true] %s148_s28 }
   0xc   :  { %116 = vmatpush.bf16.msra.mxu0 %v198_v0  ;;  %v196_v2 = vld [vmem:[#allocation5 + $0x28] sm:$0xff]  ;;  %v195_v3 = vld [vmem:[#allocation5 + $0x20] sm:$0xff]  ;;  %v194_v4 = vld [vmem:[#allocation5 + $0x18] sm:$0xff]  ;;  %s146_s25 = sshll.u32 %s288_s24, 4  ;;  %s147_s25 = int_to_ptr.vmem [resolvable:$true] %s146_s25 }
   0xd   :  { %v193_v5 = vld [vmem:[#allocation5 + $0x10] sm:$0xff]  ;;  %v192_v6 = vld [vmem:[#allocation5 + $0x8] sm:$0xff]  ;;  %v191_v7 = vld [vmem:[#allocation5] sm:$0xff] }
   0xe   :  { %v51_v8 = vld [vmem:[#allocation2] sm:$0xf] }
   0xf   :  { %v205_v9 = vld [vmem:[%s323_s2] ss:$0 sm:$0xff] }
  0x10   :  { %117 = vmatpush.bf16.msra.mxu0 %v197_v1 }
  0x14   :  { %118 = vmatpush.bf16.msra.mxu0 %v196_v2 }
  0x18   :  { %119 = vmatpush.bf16.msra.mxu0 %v195_v3 }
  0x1c   :  { %120 = vmatpush.bf16.msra.mxu0 %v194_v4 }
  0x20   :  { %121 = vmatpush.bf16.msra.mxu0 %v193_v5 }
  0x24   :  { %122 = vmatpush.bf16.msra.mxu0 %v192_v6 }
  0x28   :  { %123 = vmatpush.bf16.msra.mxu0 %v191_v7 }
  0x2b   :  { %124 = vmatmul.bf16.vlgmr.msra.gmra.mxu0 %v51_v8 }
  0xa8   :  { %v125_v10 = vpop.f32.mrf.mxu0 }
  0xa9   :  { %v139_v11 = vadd.f32 %v205_v9, %v125_v10 }
  0xab   :  { %140 = vst [vmem:[#allocation7] sm:$0xff] %v139_v11 }
  0xac   :  { %151 = dma.vmem_to_hbm [thread:$0]  %s147_s25, 128, %s149_s28, [#allocation4]  }
  0xb0   :  { %v127_v12 = vpop.f32.mrf.mxu0 }
  0xb1   :  { %282 = dma.done.wait [#allocation4], 128  }
  0xb2   :  { %283 = vsyncadd [#allocation4], 4294967168 }
  0xb3   :  { %156 = vsyncpa [#allocation3], 1 }
  0xb4   :  { %157 = vsyncpa [#allocation6], 1 }
  0xb5   :  { %158 = vsyncpa [#allocation4], 1 }

</bundles_post_ra>
